<compile_context>
chip_gen: v7x
topology: tpu7x:2x2x1
jax: 0.10.0
libtpu: 0.0.40
codegen_flags: <defaults>
</compile_context>

<pallas_src>
import functools
import math

import jax
import jax.numpy as jnp
from jax.experimental import pallas as pl
from jax.experimental.pallas import tpu as pltpu


# ----------------------------------------------------------------------------
# Helpers
# ----------------------------------------------------------------------------
def _round_up(x, m):
    return ((x + m - 1) // m) * m


def _packing_factor(embed_dim):
    """Rows packed per output row so the stored last dim is a multiple of 128."""
    if embed_dim % 128 == 0:
        return 1
    r = 128 // math.gcd(embed_dim, 128)
    return r if r <= 16 else 1   # fall back to unpacked for awkward D


def _vmem_estimate(bm, r, embed_dim, param_bytes, out_itemsize):
    lane = 128
    in_bufs = 2 * 2 * bm * lane * 4                                   # 2 inputs, double-buffered, lane-padded
    out_bufs = 2 * bm * _round_up(r * embed_dim, lane) * out_itemsize
    live = bm * (_round_up(2 * r * embed_dim, lane)
                 + _round_up(r * embed_dim, lane)) * 4                # h and y temporaries
    return in_bufs + out_bufs + live + 2 * param_bytes


def _choose_block_rows(mp, r, embed_dim, param_bytes, out_itemsize,
                       budget=20 << 20):
    """Packed-row block size: large blocks amortize the ~0.35us/step overhead,
    shrunk to a VMEM budget; >=2 blocks when possible so v7x dual-TC
    'parallel' sharding has work to split."""
    bm = 2048
    while bm > 64 and _vmem_estimate(bm, r, embed_dim, param_bytes,
                                     out_itemsize) > budget:
        bm //= 2
    if mp <= bm:
        if mp > 16:
            return max(8, _round_up((mp + 1) // 2, 8))   # 2 blocks
        return max(8, _round_up(mp, 8))                  # single tiny block
    return bm


# ----------------------------------------------------------------------------
# Fused kernel: NaN mask -> Linear(2, 2D) -> ReLU -> Linear(2D, D) -> ReLU,
# applied to r row-packed sub-rows per 128-lane output row.
# ----------------------------------------------------------------------------
def _padded_eigen_ffn_kernel(r, vec_ref, val_ref, w1v_ref, w1e_ref, b1_ref,
                             w2_ref, b2_ref, o_ref):
    vec = vec_ref[...]                                   # (bm, r)
    val = val_ref[...]                                   # (bm, r)
    # torch: x[isnan(x)] = 0
    vec = jnp.where(jnp.isnan(vec), 0.0, vec)
    val = jnp.where(jnp.isnan(val), 0.0, val)

    b1 = b1_ref[...]                                     # (1, r*2D)
    if r == 1:
        # Unpacked fallback: K=2 contraction as two VPU broadcast-FMAs.
        h = vec * w1v_ref[...] + val * w1e_ref[...] + b1
    else:
        # Block-diagonal Linear(2, 2D) over the r packed sub-rows: the MXU does
        # the scalar -> 2D fan-out, no cross-lane broadcast/relayout on VPU/XLU.
        h = (jnp.dot(vec, w1v_ref[...], preferred_element_type=jnp.float32)
             + jnp.dot(val, w1e_ref[...], preferred_element_type=jnp.float32)
             + b1)
    h = jnp.maximum(h, 0.0)                              # (bm, r*2D)  ReLU

    # Block-diagonal Linear(2D, D): (bm, r*2D) x (r*2D, r*D), f32 accumulation,
    # lane-dense (r*D multiple of 128) output -> unmasked stores.
    y = jnp.dot(h.astype(w2_ref.dtype), w2_ref[...],
                preferred_element_type=jnp.float32) + b2_ref[...]
    o_ref[...] = jnp.maximum(y, 0.0).astype(o_ref.dtype)  # ReLU


# ----------------------------------------------------------------------------
# Parameter handling
# ----------------------------------------------------------------------------
def make_params(key, embed_dim, bias=True):
    """Raw module parameters (mirrors torch.nn.Linear weights/biases)."""
    k1, k2 = jax.random.split(key)
    d = embed_dim
    w1 = 0.02 * jax.random.normal(k1, (2, 2 * d), jnp.float32)
    w2 = 0.02 * jax.random.normal(k2, (2 * d, d), jnp.float32)
    b1 = 0.01 * jnp.ones((2 * d,), jnp.float32) if bias else jnp.zeros((2 * d,), jnp.float32)
    b2 = 0.01 * jnp.ones((d,), jnp.float32) if bias else jnp.zeros((d,), jnp.float32)
    return {"w1": w1, "b1": b1, "w2": w2, "b2": b2}


def pack_params(params, *, mxu_dtype=jnp.float32):
    """One-time kernel-ready packing: block-diagonal expanded weights for the
    row-packed layout, biases tiled & reshaped, optional bf16 MXU operands
    (set mxu_dtype=jnp.bfloat16 on v6e/v7x for large D; loosen tolerances)."""
    w1 = jnp.asarray(params["w1"], jnp.float32)                  # (2, 2D)
    w2 = jnp.asarray(params["w2"], jnp.float32)                  # (2D, D)
    b1 = jnp.asarray(params["b1"], jnp.float32).reshape(1, -1)   # (1, 2D)
    b2 = jnp.asarray(params["b2"], jnp.float32).reshape(1, -1)   # (1, D)
    embed_dim = w2.shape[1]
    r = _packing_factor(embed_dim)
    if r == 1:
        w1v, w1e, w2bd, b1t, b2t = w1[0:1, :], w1[1:2, :], w2, b1, b2
    else:
        eye = jnp.eye(r, dtype=jnp.float32)
        w1v = jnp.kron(eye, w1[0:1, :])   # (r, r*2D) block-diagonal (eigvec row)
        w1e = jnp.kron(eye, w1[1:2, :])   # (r, r*2D) block-diagonal (eigval row)
        w2bd = jnp.kron(eye, w2)          # (r*2D, r*D) block-diagonal
        b1t = jnp.tile(b1, (1, r))
        b2t = jnp.tile(b2, (1, r))
    return {"r": r, "embed_dim": embed_dim,
            "w1v": w1v, "w1e": w1e, "b1": b1t,
            "w2": w2bd.astype(mxu_dtype), "b2": b2t}


# ----------------------------------------------------------------------------
# Wrapper: PaddedEigenEmbedding.forward(eigvecs, eigvals) -> (N, K, D)
# ----------------------------------------------------------------------------
def padded_eigen_embedding(eigvecs, eigvals, packed_params, *,
                           out_dtype=jnp.float32):
    r = packed_params["r"]
    d = packed_params["embed_dim"]
    w1v, w1e = packed_params["w1v"], packed_params["w1e"]
    b1, w2, b2 = packed_params["b1"], packed_params["w2"], packed_params["b2"]

    n, k = eigvecs.shape
    m = n * k
    mp = -(-m // r)                  # packed rows
    m_pad = mp * r

    # Free row-major reshapes (and a tiny zero-pad only if r does not divide M);
    # both input streams stay contiguous per block -> cheap DMA.
    vec = jnp.asarray(eigvecs, jnp.float32).reshape(-1)
    val = jnp.asarray(eigvals, jnp.float32).reshape(-1)
    if m_pad != m:
        vec = jnp.pad(vec, (0, m_pad - m))
        val = jnp.pad(val, (0, m_pad - m))
    vec = vec.reshape(mp, r)
    val = val.reshape(mp, r)

    out_itemsize = jnp.dtype(out_dtype).itemsize
    param_bytes = sum(int(a.size) * a.dtype.itemsize
                      for a in (w1v, w1e, b1, w2, b2))
    bm = _choose_block_rows(mp, r, d, param_bytes, out_itemsize)
    grid = (pl.cdiv(mp, bm),)        # partial tail block handled by Pallas

    row_spec = pl.BlockSpec((bm, r), lambda i: (i, 0))

    def full(a):
        return pl.BlockSpec(a.shape, lambda i: (0, 0))

    flops = m * (8 * d + 4 * d * d)
    bytes_accessed = m * (2 * 4 + d * out_itemsize) + param_bytes

    out = pl.pallas_call(
        functools.partial(_padded_eigen_ffn_kernel, r),
        grid=grid,
        in_specs=[row_spec, row_spec,
                  full(w1v), full(w1e), full(b1), full(w2), full(b2)],
        out_specs=pl.BlockSpec((bm, r * d), lambda i: (i, 0)),
        out_shape=jax.ShapeDtypeStruct((mp, r * d), out_dtype),
        compiler_params=pltpu.CompilerParams(
            dimension_semantics=("parallel",),
            vmem_limit_bytes=32 * 1024 * 1024),
        cost_estimate=pl.CostEstimate(flops=flops, transcendentals=0,
                                      bytes_accessed=bytes_accessed),
    )(vec, val, w1v, w1e, b1, w2, b2)

    # (mp, r*D) row-major == (m_pad, D) row-major: free reshape; slice only if padded.
    out = out.reshape(m_pad, d)
    if m_pad != m:
        out = out[:m]
    return out.reshape(n, k, d)


# Pure-JAX reference (mirrors the PyTorch module) for correctness checking.
def _reference(eigvecs, eigvals, params):
    x = jnp.stack((eigvecs, eigvals), axis=2)                # (N, K, 2)
    x = jnp.where(jnp.isnan(x), 0.0, x)
    h = jnp.maximum(x @ params["w1"] + params["b1"], 0.0)
    return jnp.maximum(h @ params["w2"] + params["b2"], 0.0)


# ----------------------------------------------------------------------------
if __name__ == "__main__":
    key = jax.random.PRNGKey(0)
    k_par, k_vec, k_val = jax.random.split(key, 3)

    N, K, D = 16, 8, 32   # nodes, eigenvectors, embed_dim

    params = make_params(k_par, embed_dim=D, bias=True)
    packed = pack_params(params)          # f32 MXU operands / f32 out (bit-close to torch)

    eigvecs = jax.random.normal(k_vec, (N, K), jnp.float32)
    eigvals = jax.random.normal(k_val, (N, K), jnp.float32)
    # emulate padded spectra (NaNs) to exercise the in-kernel masking
    eigvals = eigvals.at[:, -1].set(jnp.nan)
    eigvecs = eigvecs.at[0, -2:].set(jnp.nan)

    out = padded_eigen_embedding(eigvecs, eigvals, packed)
    out = jax.block_until_ready(out)

    ref = _reference(eigvecs, eigvals, params)
    assert out.shape == (N, K, D)
    assert bool(jnp.all(jnp.isfinite(out)))
    assert bool(jnp.allclose(out, ref, atol=1e-5, rtol=1e-5)), \
        float(jnp.max(jnp.abs(out - ref)))
    print("KERNEL_OK")
</pallas_src>

<mosaic_0001>
module attributes {stable_mosaic.version = 11 : i64} {
  func.func @_padded_eigen_ffn_kernel(%arg0: i32, %arg1: memref<16x4xf32, #tpu.memory_space<vmem>>, %arg2: memref<16x4xf32, #tpu.memory_space<vmem>>, %arg3: memref<4x256xf32, #tpu.memory_space<vmem>>, %arg4: memref<4x256xf32, #tpu.memory_space<vmem>>, %arg5: memref<1x256xf32, #tpu.memory_space<vmem>>, %arg6: memref<256x128xf32, #tpu.memory_space<vmem>>, %arg7: memref<1x128xf32, #tpu.memory_space<vmem>>, %arg8: memref<16x128xf32, #tpu.memory_space<vmem>>) attributes {dimension_semantics = [#tpu.dimension_semantics<parallel>], iteration_bounds = array<i64: 2>, scalar_prefetch = 0 : i64, scratch_operands = 0 : i64, tpu.core_type = #tpu.core_type<tc>, window_params = [{transform_indices = @transform_0, window_bounds = array<i64: 16, 4>}, {transform_indices = @transform_1, window_bounds = array<i64: 16, 4>}, {pipeline_mode = #tpu.pipeline_mode<synchronous>, transform_indices = @transform_2, window_bounds = array<i64: 4, 256>}, {pipeline_mode = #tpu.pipeline_mode<synchronous>, transform_indices = @transform_3, window_bounds = array<i64: 4, 256>}, {pipeline_mode = #tpu.pipeline_mode<synchronous>, transform_indices = @transform_4, window_bounds = array<i64: 1, 256>}, {pipeline_mode = #tpu.pipeline_mode<synchronous>, transform_indices = @transform_5, window_bounds = array<i64: 256, 128>}, {pipeline_mode = #tpu.pipeline_mode<synchronous>, transform_indices = @transform_6, window_bounds = array<i64: 1, 128>}, {transform_indices = @transform_7, window_bounds = array<i64: 16, 128>}]} {
    %c0 = arith.constant 0 : index
    %c0_0 = arith.constant 0 : index
    %0 = vector.load %arg1[%c0, %c0_0] : memref<16x4xf32, #tpu.memory_space<vmem>>, vector<16x4xf32>
    %c0_1 = arith.constant 0 : index
    %c0_2 = arith.constant 0 : index
    %1 = vector.load %arg2[%c0_1, %c0_2] : memref<16x4xf32, #tpu.memory_space<vmem>>, vector<16x4xf32>
    %2 = arith.cmpf one, %0, %0 : vector<16x4xf32>
    %cst = arith.constant 0.000000e+00 : f32
    %3 = vector.broadcast %cst : f32 to vector<16x4xf32>
    %4 = arith.select %2, %3, %0 : vector<16x4xi1>, vector<16x4xf32>
    %5 = arith.cmpf one, %1, %1 : vector<16x4xf32>
    %cst_3 = arith.constant 0.000000e+00 : f32
    %6 = vector.broadcast %cst_3 : f32 to vector<16x4xf32>
    %7 = arith.select %5, %6, %1 : vector<16x4xi1>, vector<16x4xf32>
    %c0_4 = arith.constant 0 : index
    %c0_5 = arith.constant 0 : index
    %8 = vector.load %arg5[%c0_4, %c0_5] : memref<1x256xf32, #tpu.memory_space<vmem>>, vector<1x256xf32>
    %c0_6 = arith.constant 0 : index
    %c0_7 = arith.constant 0 : index
    %9 = vector.load %arg3[%c0_6, %c0_7] : memref<4x256xf32, #tpu.memory_space<vmem>>, vector<4x256xf32>
    %cst_8 = arith.constant dense<0.000000e+00> : vector<16x256xf32>
    %10 = tpu.matmul %4, %9, %cst_8 {dimension_numbers = #tpu.dot_dimension_numbers<[1], [0], [0], [1], [0, 0, 1, 1], [], []>} : vector<16x4xf32>, vector<4x256xf32>, vector<16x256xf32> -> vector<16x256xf32>
    %c0_9 = arith.constant 0 : index
    %c0_10 = arith.constant 0 : index
    %11 = vector.load %arg4[%c0_9, %c0_10] : memref<4x256xf32, #tpu.memory_space<vmem>>, vector<4x256xf32>
    %cst_11 = arith.constant dense<0.000000e+00> : vector<16x256xf32>
    %12 = tpu.matmul %7, %11, %cst_11 {dimension_numbers = #tpu.dot_dimension_numbers<[1], [0], [0], [1], [0, 0, 1, 1], [], []>} : vector<16x4xf32>, vector<4x256xf32>, vector<16x256xf32> -> vector<16x256xf32>
    %13 = arith.addf %10, %12 : vector<16x256xf32>
    %14 = vector.broadcast %8 : vector<1x256xf32> to vector<16x256xf32>
    %15 = arith.addf %13, %14 : vector<16x256xf32>
    %cst_12 = arith.constant 0.000000e+00 : f32
    %16 = vector.broadcast %cst_12 : f32 to vector<16x256xf32>
    %17 = arith.maximumf %15, %16 : vector<16x256xf32>
    %c0_13 = arith.constant 0 : index
    %c0_14 = arith.constant 0 : index
    %18 = vector.load %arg6[%c0_13, %c0_14] : memref<256x128xf32, #tpu.memory_space<vmem>>, vector<256x128xf32>
    %cst_15 = arith.constant dense<0.000000e+00> : vector<16x128xf32>
    %19 = tpu.matmul %17, %18, %cst_15 {dimension_numbers = #tpu.dot_dimension_numbers<[1], [0], [0], [1], [0, 0, 1, 1], [], []>} : vector<16x256xf32>, vector<256x128xf32>, vector<16x128xf32> -> vector<16x128xf32>
    %c0_16 = arith.constant 0 : index
    %c0_17 = arith.constant 0 : index
    %20 = vector.load %arg7[%c0_16, %c0_17] : memref<1x128xf32, #tpu.memory_space<vmem>>, vector<1x128xf32>
    %21 = vector.broadcast %20 : vector<1x128xf32> to vector<16x128xf32>
    %22 = arith.addf %19, %21 : vector<16x128xf32>
    %cst_18 = arith.constant 0.000000e+00 : f32
    %23 = vector.broadcast %cst_18 : f32 to vector<16x128xf32>
    %24 = arith.maximumf %22, %23 : vector<16x128xf32>
    %c0_19 = arith.constant 0 : index
    %c0_20 = arith.constant 0 : index
    %25 = vector.load %arg8[%c0_19, %c0_20] : memref<16x128xf32, #tpu.memory_space<vmem>>, vector<16x128xf32>
    tpu.vector_store %arg8[%c0_19, %c0_20], %24 {strides = array<i32>} : memref<16x128xf32, #tpu.memory_space<vmem>>, vector<16x128xf32>,
    return
  }
  func.func @transform_0(%arg0: i32) -> (i32, i32) {
    %c0_i32 = arith.constant 0 : i32
    %c0_i32_0 = arith.constant 0 : i32
    return %arg0, %c0_i32 : i32, i32
  }
  func.func @transform_1(%arg0: i32) -> (i32, i32) {
    %c0_i32 = arith.constant 0 : i32
    %c0_i32_0 = arith.constant 0 : i32
    return %arg0, %c0_i32 : i32, i32
  }
  func.func @transform_2(%arg0: i32) -> (i32, i32) {
    %c0_i32 = arith.constant 0 : i32
    %c0_i32_0 = arith.constant 0 : i32
    %c0_i32_1 = arith.constant 0 : i32
    return %c0_i32, %c0_i32_0 : i32, i32
  }
  func.func @transform_3(%arg0: i32) -> (i32, i32) {
    %c0_i32 = arith.constant 0 : i32
    %c0_i32_0 = arith.constant 0 : i32
    %c0_i32_1 = arith.constant 0 : i32
    return %c0_i32, %c0_i32_0 : i32, i32
  }
  func.func @transform_4(%arg0: i32) -> (i32, i32) {
    %c0_i32 = arith.constant 0 : i32
    %c0_i32_0 = arith.constant 0 : i32
    %c0_i32_1 = arith.constant 0 : i32
    return %c0_i32, %c0_i32_0 : i32, i32
  }
  func.func @transform_5(%arg0: i32) -> (i32, i32) {
    %c0_i32 = arith.constant 0 : i32
    %c0_i32_0 = arith.constant 0 : i32
    %c0_i32_1 = arith.constant 0 : i32
    return %c0_i32, %c0_i32_0 : i32, i32
  }
  func.func @transform_6(%arg0: i32) -> (i32, i32) {
    %c0_i32 = arith.constant 0 : i32
    %c0_i32_0 = arith.constant 0 : i32
    %c0_i32_1 = arith.constant 0 : i32
    return %c0_i32, %c0_i32_0 : i32, i32
  }
  func.func @transform_7(%arg0: i32) -> (i32, i32) {
    %c0_i32 = arith.constant 0 : i32
    %c0_i32_0 = arith.constant 0 : i32
    return %arg0, %c0_i32 : i32, i32
  }
}

</mosaic_0001>

<bundles_post_ra>
// kernel: tpu_custom_call.1
= control target key start
LH: loop header
LB: loop body
LE: loop exit
PB: predicated region body
PF: predicated region fallthrough
CT: control target
= control target key end

     0   :  { %12 = vsyncpa [#allocation3], 0  ;;  %s1213_s0 = inlined_call_operand.vmem [shape: f32[32,4], index: 0, kind: input, shape index: {}]   ;;  %s1214_s1 = inlined_call_operand.vmem [shape: f32[32,4], index: 1, kind: input, shape index: {}]   ;;  %s1215_s2 = inlined_call_operand.vmem [shape: f32[4,256], index: 2, kind: input, shape index: {}]   ;;  %s1216_s3 = inlined_call_operand.vmem [shape: f32[4,256], index: 3, kind: input, shape index: {}]   ;;  %s1217_s4 = inlined_call_operand.vmem [shape: f32[1,256], index: 4, kind: input, shape index: {}]   ;;  %s1218_s5 = inlined_call_operand.hbm [shape: f32[256,128], index: 5, kind: input, shape index: {}]   ;;  %s1219_s6 = inlined_call_operand.vmem [shape: f32[1,128], index: 6, kind: input, shape index: {}]   ;;  %s1220_s7 = inlined_call_operand.hbm [shape: f32[32,128], index: 7, kind: output, shape index: {}]  }
   0x1   :  { %13 = vsyncpa [#allocation4], 0 }
   0x2   :  { %15 = vsyncpa [#allocation4 + $0x1], 0  ;;  %s1049_s24 = smov 0   ;;  %s1051_s25 = smov 0  }
   0x3   :  { %s1053_s26 = smov 0   ;;  %s1055_s27 = smov 0  }
   0x4 LB: > { %s1070_s28 = sadd.s32 4294967295, %s1000_s27   ;;  %s749_s29 = sadd.s32 4294967294, %s1000_s27   ;;  %s1000_s27 = sphi %s1055_s27, %s1236_s27   ;;  %s996_s26 = sphi %s1053_s26, %s1235_s26   ;;  %s992_s25 = sphi %s1051_s25, %s1234_s25   ;;  %s988_s24 = sphi %s1049_s24, %s1233_s24  }
   0x5   : > { %s1074_s30 = sadd.s32 1, %s1000_s27   ;;  %s185_s8 = sadd.s32 1, %s996_s26 }
   0x6   : > { %s182_s9 = ssub.s32 %s1000_s27, %s1074_s30  ;;  %p195_p0 = scmp.ne.s32.totalorder %s996_s26, %s992_s25 }
   0x7   : > { %p183_p1 = scmp.eq.s32.totalorder %s182_s9, 0  ;;  %p196_p2 = scmp.eq.s32.totalorder %s1070_s28, 1 }
   0x8   : > { %p201_p3 = scmp.ne.s32.totalorder %s992_s25, %s988_s24  ;;  %p202_p4 = scmp.eq.s32.totalorder %s749_s29, 1 }
   0x9   : > { %s1085_s10 = scalar_select %p183_p1, %s996_s26, %s185_s8  }
   0xa   : > { %p1087_p5 = por %p196_p2, %p195_p0  ;;  %p1091_p6 = por %p202_p4, %p201_p3 }
   0xb   : > { %p750_p7 = scmp.ge.s32.totalorder %s1000_s27, 1  ;;  %p209_p8 = scmp.lt.s32.totalorder %s1000_s27, 3 }
   0xc   : > { %s1224_s11 = scalar_select %p1087_p5, 1, 0 }
   0xd   : > { %s1225_s12 = scalar_select %p1091_p6, 1, 0 }
   0xe   : > { %p1221_p9 = scmp.eq.s32.totalorder %s1070_s28, 0  ;;  %p1098_p10 = pnand %p750_p7, %p209_p8 }
   0xf   : > { %s1002_s14 = smov [#allocation2]   ;;  %s906_s19 = scalar_lea.hbm %s1218_s5, 4096 }
  0x10   : > { %s1226_s13 = scalar_select %p1098_p10, 1, 0 }
  0x11   : > { %s230_s15 = sshll.u32 %s1002_s14, 4  ;;  %p855_p11 = pneg %p1098_p10  ;;  %s231_s15 = int_to_ptr.vmem [resolvable:$true] %s230_s15 }
  0x12   : > { %p907_p13 = scmp.ne.s32.totalorder %s1218_s5, %s906_s19  ;;  %p913_p3 = scmp.lt.u32.totalorder %s906_s19, %s1218_s5 }
  0x13   : > { %p1106_p12 = pnand %p1221_p9, %p855_p11 }
  0x15   : > { %p908_p0 = pneg %p1106_p12 }
  0x17   : > { %p909_p1 = pnand %p908_p0, %p907_p13 }
  0x19   : > { %p910_p2 = pneg %p909_p1 }
  0x1b   : > { %p915_p4 = pnand %p913_p3, %p910_p2 }
  0x1d   : > { %918 = shalt.err (!%p915_p4)
}
  0x1e   : > { %s919_s29 = scalar_lea.vmem %s231_s15, 4096  ;;  %p927_p9 = scmp.lt.s32.totalorder %s231_s15, %s231_s15 }
  0x1f   : > { %p920_p7 = scmp.ne.s32.totalorder %s231_s15, %s919_s29  ;;  %p928_p6 = scmp.lt.s32.totalorder %s919_s29, %s919_s29 }
  0x21   : > { %p922_p8 = pnand %p920_p7, %p908_p0  ;;  %p929_p5 = por %p928_p6, %p927_p9 }
  0x23   : > { %p923_p11 = pneg %p922_p8 }
  0x25   : > { %p930_p10 = pnand %p929_p5, %p923_p11 }
  0x27   : > { %933 = shalt.err (!%p930_p10)
}
  0x28   : > { %s1003_s8 = smov 128   ;;  %s1004_s9 = smov 8  }
  0x29   : > { %858 = dma.hbm_to_vmem [thread:$0]  (!%p1106_p12), %s1218_s5, 4096, %s231_s15, [#allocation3], %s1003_s8, %s1003_s8, %s1004_s9  }
  0x2a   : > { %p1228_p13 = scmp.ne.s32.totalorder %s1226_s13, 0 }
  0x2b   : > { %p1229_p1 = scmp.eq.s32.totalorder (!%p1228_p13), %s1070_s28, 0 }
  0x2c   : > { %267 = sbr.rel (%p1228_p13) target bundleno = 525 (0x20d), region = 48 }
  0x33   : > { %979 = dma.done.wait (%p1229_p1), [#allocation3], 4096   ;;  %p1230_p0 = pmov %p1229_p1 }
  0x34   : > { %s756_s18 = sshll.u32 %s1070_s28, 1  ;;  %v1005_v0 = vmov 0.0   ;;  %v331_v1 = vld [vmem:[%s1216_s3] sm:$0xff]  ;;  %vm341_vm0 = vcmask 1043456   ;;  %vm334_vm2 = vcmask 31744   ;;  %v548_v9 = vld [vmem:[#allocation2 + $0x88] sm:$0xff]  ;;  %v513_v61 = vlaneseq }
  0x35   : > { %981 = vsyncadd (%p1230_p0), [#allocation3], 4294963200  ;;  %410 = vmatprep.mubr.f32.mxu0 %v1005_v0  ;;  %p305_p5 = scmp.lt.s32.totalorder %s756_s18, 3  ;;  %v333_v3 = vcombine.high %v331_v1, %v331_v1  ;;  %v330_v4 = vld [vmem:[%s1215_s2] sm:$0xff]  ;;  %v532_v12 = vld [vmem:[#allocation2 + $0x8] sm:$0xff]  ;;  %s774_s13 = sshll.u32 %s1070_s28, 8 }
  0x36   : > { %v424_v7 = vcombine.high %v330_v4, %v330_v4  ;;  %v547_v8 = vld [vmem:[#allocation2 + $0x80] sm:$0xff]  ;;  %v549_v13 = vld [vmem:[#allocation2 + $0x90] sm:$0xff]  ;;  %v550_v14 = vld [vmem:[#allocation2 + $0x98] sm:$0xff]  ;;  %v514_v62 = vshrl.u32 %v513_v61, 7  ;;  %p1231_p9 = scmp.ne.s32.totalorder %s1224_s11, 0  ;;  %s1006_s28 = smov [#allocation5]  }
  0x37   : > { %s1238_s18 = smov (!%p305_p5, %s756_s18), 3  ;;  %v531_v10 = vld [vmem:[#allocation2] sm:$0xff]  ;;  %760 = vmatprep.subr.msk.mxu0 %vm341_vm0, %v333_v3  ;;  %v813_v11 = vpack.c.bf16 %v548_v9, %v547_v8  ;;  %v817_v17 = vpack.c.bf16 %v550_v14, %v549_v13  ;;  %v533_v18 = vld [vmem:[#allocation2 + $0x10] sm:$0xff]  ;;  %v534_v19 = vld [vmem:[#allocation2 + $0x18] sm:$0xff]  ;;  %s938_s14 = sshll.u32 %s1006_s28, 4  ;;  %s939_s14 = int_to_ptr.vmem [resolvable:$false] %s938_s14 }
  0x38   : > { %s757_s16 = sshll.u32 %s1238_s18, 3  ;;  %761 = vmatpush1.msk.msra.mxu0 %vm341_vm0, %v331_v1  ;;  %v815_v16 = vpack.c.bf16 %v532_v12, %v531_v10  ;;  %v551_v21 = vld [vmem:[#allocation2 + $0xa0] sm:$0xff]  ;;  %v552_v22 = vld [vmem:[#allocation2 + $0xa8] sm:$0xff]  ;;  %v819_v24 = vpack.c.bf16 %v534_v19, %v533_v18  ;;  %v553_v29 = vld [vmem:[#allocation2 + $0xb0] sm:$0xff]  ;;  %v515_v63 = vsub.s32 0, %v514_v62  ;;  %v519_v1 = vsub.s32 1, %v514_v62 }
  0x39   : > { %s314_s15 = scalar_lea.vmem %s1214_s1, %s757_s16  ;;  %s1142_s29 = scalar_lea.vmem %s1213_s0, %s757_s16  ;;  %764 = vmatprep.subr.msk.mxu0 %vm341_vm0, %v424_v7  ;;  %814 = vmatprep.subr.bf16.mxu1 %v813_v11  ;;  %v821_v25 = vpack.c.bf16 %v552_v22, %v551_v21  ;;  %v535_v26 = vld [vmem:[#allocation2 + $0x20] sm:$0xff]  ;;  %v536_v27 = vld [vmem:[#allocation2 + $0x28] sm:$0xff]  ;;  %v554_v30 = vld [vmem:[#allocation2 + $0xb8] sm:$0xff] }
  0x3a   : > { %v319_v2 = vld [vmem:[%s314_s15] sm:$0xff]  ;;  %v320_v5 = vld [vmem:[%s314_s15 + $0x8] sm:$0xff]  ;;  %816 = vmatpush3.bf16.msra.mxu1 %v815_v16  ;;  %v823_v31 = vpack.c.bf16 %v536_v27, %v535_v26  ;;  %v825_v32 = vpack.c.bf16 %v554_v30, %v553_v29  ;;  %v537_v33 = vld [vmem:[#allocation2 + $0x30] sm:$0xff]  ;;  %s301_s18 = sand.u32 1, %s992_s25   ;;  %s940_s17 = scalar_lea.vmem %s939_s14, 512 }
  0x3b   : > { %vm325_vm1 = vcmp.ne.f32.partialorder %v319_v2, %v319_v2  ;;  %vm326_vm3 = vcmp.ne.f32.partialorder %v320_v5, %v320_v5  ;;  %v317_v15 = vld [vmem:[%s1142_s29] sm:$0xff]  ;;  %v318_v23 = vld [vmem:[%s1142_s29 + $0x8] sm:$0xff]  ;;  %818 = vmatprep.subr.bf16.mxu1 %v817_v17  ;;  %v538_v34 = vld [vmem:[#allocation2 + $0x38] sm:$0xff]  ;;  %s755_s20 = sshll.u32 %s301_s18, 4  ;;  %s1170_s29 = scalar_lea.hbm %s1220_s7, %s774_s13 }
  0x3c   : > { %v327_v6 = vsel %vm325_vm1, 0.0, %v319_v2  ;;  %v328_v20 = vsel %vm326_vm3, 0.0, %v320_v5  ;;  %vm321_vm4 = vcmp.ne.f32.partialorder %v317_v15, %v317_v15  ;;  %vm322_vm5 = vcmp.ne.f32.partialorder %v318_v23, %v318_v23  ;;  %v555_v36 = vld [vmem:[#allocation2 + $0xc0] sm:$0xff]  ;;  %v556_v37 = vld [vmem:[#allocation2 + $0xc8] sm:$0xff]  ;;  %v557_v42 = vld [vmem:[#allocation2 + $0xd0] sm:$0xff]  ;;  %s303_s15 = scalar_lea.vmem [#allocation5], %s755_s20 }
  0x3d   : > { %762 = vmatmul.mubr.msk.f32.vlgmr.msra.gmra.mrb[0].mxu0 %vm334_vm2, %v327_v6  ;;  %v323_v28 = vsel %vm321_vm4, 0.0, %v317_v15  ;;  %v324_v35 = vsel %vm322_vm5, 0.0, %v318_v23  ;;  %v827_v38 = vpack.c.bf16 %v538_v34, %v537_v33  ;;  %v829_v39 = vpack.c.bf16 %v556_v37, %v555_v36  ;;  %v539_v40 = vld [vmem:[#allocation2 + $0x40] sm:$0xff]  ;;  %v540_v41 = vld [vmem:[#allocation2 + $0x48] sm:$0xff]  ;;  %v558_v43 = vld [vmem:[#allocation2 + $0xd8] sm:$0xff]  ;;  %s663_s21 = sshll.u32 %s303_s15, 4  ;;  %s1165_s21 = int_to_ptr.vmem [resolvable:$true] %s663_s21 }
  0x3e   : > { %765 = vmatpush1.msk.msra.mxu0 %vm341_vm0, %v330_v4  ;;  %416 = vmatprep.mubr.f32.mxu0 %v1005_v0  ;;  %v831_v44 = vpack.c.bf16 %v540_v41, %v539_v40  ;;  %v833_v45 = vpack.c.bf16 %v558_v43, %v557_v42  ;;  %v541_v46 = vld [vmem:[#allocation2 + $0x50] sm:$0xff]  ;;  %v542_v47 = vld [vmem:[#allocation2 + $0x58] sm:$0xff]  ;;  %v559_v48 = vld [vmem:[#allocation2 + $0xe0] sm:$0xff]  ;;  %s1172_s8 = scalar_lea.sflag [#allocation4], %s301_s18  ;;  %s934_s9 = scalar_lea.vmem %s1165_s21, 256 }
  0x3f   : > { %820 = vmatpush3.bf16.msra.mxu1 %v819_v24  ;;  %v560_v49 = vld [vmem:[#allocation2 + $0xe8] sm:$0xff]  ;;  %v835_v50 = vpack.c.bf16 %v542_v47, %v541_v46  ;;  %v543_v52 = vld [vmem:[#allocation2 + $0x60] sm:$0xff]  ;;  %v561_v55 = vld [vmem:[#allocation2 + $0xf0] sm:$0xff]  ;;  %p935_p6 = scmp.ne.s32.totalorder %s1165_s21, %s934_s9  ;;  %p941_p2 = scmp.lt.s32.totalorder %s1165_s21, %s939_s14 }
  0x40   : > { %822 = vmatprep.subr.bf16.mxu1 %v821_v25  ;;  %v837_v51 = vpack.c.bf16 %v560_v49, %v559_v48  ;;  %v544_v53 = vld [vmem:[#allocation2 + $0x68] sm:$0xff]  ;;  %v562_v56 = vld [vmem:[#allocation2 + $0xf8] sm:$0xff]  ;;  %v545_v58 = vld [vmem:[#allocation2 + $0x70] sm:$0xff]  ;;  %p942_p3 = scmp.lt.s32.totalorder %s940_s17, %s934_s9 }
  0x41   : > { %763 = vmatmul.mubr.msk.f32.gmra.mrb[2].mxu0 %vm334_vm2, %v328_v20  ;;  %v839_v54 = vpack.c.bf16 %v544_v53, %v543_v52  ;;  %v841_v57 = vpack.c.bf16 %v562_v56, %v561_v55  ;;  %v546_v59 = vld [vmem:[#allocation2 + $0x78] sm:$0xff]  ;;  %v768_v17 = vld [vmem:[%s1219_s6] ss:$0 sm:$0xff]  ;;  %p936_p10 = pnand %p935_p6, %p1231_p9 }
  0x42   : > { %499 = vmatprep.mubr.f32.mxu0 %v1005_v0  ;;  %v843_v60 = vpack.c.bf16 %v546_v59, %v545_v58  ;;  %p943_p4 = por %p942_p3, %p941_p2 }
  0x43   : > { %824 = vmatpush3.bf16.msra.mxu1 %v823_v31  ;;  %p937_p12 = pneg %p936_p10 }
  0x44   : > { %826 = vmatprep.subr.bf16.mxu1 %v825_v32 }
  0x45   : > { %766 = vmatmul.mubr.msk.f32.vlgmr.msra.gmra.mrb[0].mxu0 %vm334_vm2, %v323_v28  ;;  %p944_p7 = pnand %p943_p4, %p937_p12 }
  0x46   : > { %505 = vmatprep.mubr.f32.mxu0 %v1005_v0  ;;  %v329_v0 = vld [vmem:[%s1217_s4] sm:$0x3] }
  0x47   : > { %828 = vmatpush3.bf16.msra.mxu1 %v827_v38  ;;  %v516_v2 = vrot.slane %v329_v0, %v515_v63  ;;  %v520_v3 = vrot.slane %v329_v0, %v519_v1 }
  0x48   : > { %830 = vmatprep.subr.bf16.mxu1 %v829_v39 }
  0x49   : > { %767 = vmatmul.mubr.msk.f32.gmra.mrb[2].mxu0 %vm334_vm2, %v324_v35 }
  0x4b   : > { %832 = vmatpush3.bf16.msra.mxu1 %v831_v44 }
  0x4c   : > { %834 = vmatprep.subr.bf16.mxu1 %v833_v45 }
  0x4f   : > { %836 = vmatpush3.bf16.msra.mxu1 %v835_v50 }
  0x50   : > { %838 = vmatprep.subr.bf16.mxu1 %v837_v51 }
  0x53   : > { %840 = vmatpush3.bf16.msra.mxu1 %v839_v54 }
  0x54   : > { %842 = vmatprep.subr.bf16.mxu1 %v841_v57 }
  0x57   : > { %844 = vmatpush3.bf16.msra.mxu1 %v843_v60 }
 0x118   : > { %v501_v4 = vpop.f32.mrb[0].mxu0 }
 0x119   : > { %v523_v5 = vadd.f32 %v516_v2, %v501_v4  ;;  %v503_v6 = vpop.f32.mrb[1].mxu0 }
 0x11a   : > { %v524_v7 = vadd.f32 %v520_v3, %v503_v6 }
 0x11b   : > { %v527_v10 = vmax.f32 %v523_v5, 0.0 }
 0x11c   : > { %v507_v8 = vpop.f32.mrb[2].mxu0  ;;  %v528_v9 = vmax.f32 %v524_v7, 0.0 }
 0x11d   : > { %v525_v11 = vadd.f32 %v516_v2, %v507_v8  ;;  %v509_v12 = vpop.f32.mrb[3].mxu0 }
 0x11e   : > { %v526_v13 = vadd.f32 %v520_v3, %v509_v12  ;;  %634 = vmatprep.mubr.f32.mxu1 %v528_v9 }
 0x11f   : > { %635 = vmatmul.mubr.f32.vlgmr.msra.gmra.mrb[0].mxu1 %v527_v10  ;;  %v529_v15 = vmax.f32 %v525_v11, 0.0 }
 0x120   : > { %v530_v14 = vmax.f32 %v526_v13, 0.0 }
 0x122   : > { %639 = vmatprep.mubr.f32.mxu1 %v530_v14 }
 0x123   : > { %640 = vmatmul.mubr.f32.gmra.mrb[2].mxu1 %v529_v15 }
 0x1f2   : > { %v807_v16 = vpop.f32.mrb[0].mxu1 }
 0x1f3   : > { %v808_v18 = vpop.f32.mrb[1].mxu1 }
 0x1f4   : > { %v809_v19 = vadd.f32 %v808_v18, %v807_v16 }
 0x1f6   : > { %v637_v20 = vadd.f32 %v809_v19, %v768_v17  ;;  %v810_v21 = vpop.f32.mrb[2].mxu1 }
 0x1f7   : > { %v811_v22 = vpop.f32.mrb[3].mxu1 }
 0x1f8   : > { %v645_v23 = vmax.f32 %v637_v20, 0.0  ;;  %v812_v24 = vadd.f32 %v811_v22, %v810_v21 }
 0x1fa   : > { %647 = vst [vmem:[%s303_s15] sm:$0xff] %v645_v23  ;;  %v642_v25 = vadd.f32 %v812_v24, %v768_v17 }
 0x1fc   : > { %v646_v26 = vmax.f32 %v642_v25, 0.0 }
 0x1fe   : > { %648 = vst [vmem:[%s303_s15 + $0x8] sm:$0xff] %v646_v26 }
 0x1ff   : > { %947 = shalt.err (!%p944_p7)
}
 0x200   : > { %s948_s18 = scalar_lea.hbm %s1170_s29, 256  ;;  %s952_s20 = scalar_lea.hbm %s1220_s7, 512 }
 0x201   : > { %p949_p8 = scmp.ne.s32.totalorder %s1170_s29, %s948_s18  ;;  %p953_p1 = scmp.lt.u32.totalorder %s1170_s29, %s1220_s7 }
 0x202   : > { %p954_p0 = scmp.lt.u32.totalorder %s952_s20, %s948_s18  ;;  %p956_p6 = scmp.lt.u32.totalorder %s948_s18, %s1170_s29 }
 0x203   : > { %p950_p11 = pnand %p949_p8, %p1231_p9 }
 0x204   : > { %p955_p5 = por %p954_p0, %p953_p1 }
 0x205   : > { %p951_p13 = pneg %p950_p11 }
 0x206   : > { %p957_p10 = por %p956_p6, %p955_p5 }
 0x208   : > { %p958_p12 = pnand %p957_p10, %p951_p13 }
 0x20a   : > { %961 = shalt.err (!%p958_p12)
}
 0x20b   : > { %s1007_s22 = smov 128   ;;  %s1008_s23 = smov 8  }
 0x20c   : > { %853 = dma.vmem_to_hbm [thread:$0]  (%p1231_p9), %s1165_s21, 256, %s1170_s29, %s1172_s8, %s1007_s22, %s1007_s22, %s1008_s23  }
 0x20d PF: > { %p865_p2 = scmp.ge.s32.totalorder %s1000_s27, 2  ;;  %s678_s9 = sand.u32 1, %s988_s24  }
 0x20e   : > { %p1232_p3 = scmp.ne.s32.totalorder %s1225_s12, 0  ;;  %s679_s28 = scalar_lea.sflag [#allocation4], %s678_s9 }
 0x210   : > { %p860_p4 = pnand %p865_p2, %p1232_p3 }
 0x212   : > { %983 = dma.done.wait (!%p860_p4), %s679_s28, 256  }
 0x213   : > { %985 = vsyncadd (!%p860_p4), %s679_s28, 4294967040  ;;  %p18_p7 = scmp.ge.s32.totalorder %s1074_s30, 4   ;;  %s1233_s24 = smov %s992_s25 }
 0x214   : > { %s1234_s25 = smov %s996_s26  ;;  %s1235_s26 = smov %s1085_s10 }
 0x215   : > { %s1236_s27 = smov %s1074_s30  ;;  %20 = sbr.rel (!%p18_p7) target bundleno = 4 (0x4), region = 91 }
 0x21c   :  { %684 = vsyncpa [#allocation3], 1 }
 0x21d   :  { %686 = vsyncpa [#allocation3 + $0x1], 1 }
 0x21e   :  { %687 = vsyncpa [#allocation4], 1 }
 0x21f   :  { %689 = vsyncpa [#allocation4 + $0x1], 1 }

</bundles_post_ra>
